<compile_context>
chip_gen: v6e
topology: v6e:2x2x1
jax: 0.10.0
libtpu: 0.0.40
codegen_flags: <defaults>
</compile_context>

<pallas_src>
import functools

import jax
import jax.numpy as jnp
from jax.experimental import pallas as pl
from jax.experimental.pallas import tpu as pltpu


# ---------------------------------------------------------------------------
# Kernel
# ---------------------------------------------------------------------------
def _linear_kernel(x_ref, w_ref, b_ref, o_ref, acc_ref):
    # x_ref: (bm, bk) f32   -> cast to bf16 in-kernel (VPU, hidden under DMA)
    # w_ref: (bk, N)  bf16  -> resident per K-step
    # b_ref: (1, N)   f32
    # o_ref: (bm, N)  out dtype
    # acc_ref: (bm, N) f32 VMEM scratch accumulator
    k = pl.program_id(1)

    @pl.when(k == 0)
    def _():
        acc_ref[...] = jnp.zeros_like(acc_ref)

    acc_ref[...] += jnp.dot(
        x_ref[...].astype(jnp.bfloat16),
        w_ref[...],
        preferred_element_type=jnp.float32,
    )

    @pl.when(k == pl.num_programs(1) - 1)
    def _():
        o_ref[...] = (acc_ref[...] + b_ref[...]).astype(o_ref.dtype)


# ---------------------------------------------------------------------------
# Tile-size selection
# ---------------------------------------------------------------------------
_VMEM_BUDGET = 24 * 1024 * 1024        # conservative: fits v7x 64 MiB/TC with headroom
_VMEM_LIMIT_BYTES = 32 * 1024 * 1024   # explicit scoped-VMEM limit (safe on v5e/v6e/v7x)
_MAX_BK = 2048                         # max reduction tile


def _pick_bk(K):
    """Reduction tile: full K if small, else largest multiple of 128 (<= _MAX_BK)
    that divides K so no zero-padding of the reduction axis is needed."""
    if K <= _MAX_BK:
        return K
    bk = (_MAX_BK // 128) * 128
    while bk >= 128:
        if K % bk == 0:
            return bk
        bk -= 128
    # TODO(synk): K > _MAX_BK with no 128-multiple divisor -> fall back to
    # monolithic K (may need a larger vmem_limit for extreme input_dim).
    return K


def _pick_bm(M, bk, N, requested, out_bytes):
    """Largest multiple-of-8 M tile whose double-buffered tiles + accumulator
    stay under the VMEM budget. Weight/bias tiles are counted double-buffered
    once (their index_map only varies with k, not bm)."""
    resident = 2 * (bk * N * 2) + 2 * (N * 4)                    # bf16 weight + f32 bias
    per_row = 2 * (bk * 4) + 2 * (N * out_bytes) + N * 4          # f32 x, out, f32 acc
    avail = max(_VMEM_BUDGET - resident, per_row * 8)
    cap = max(8, (avail // per_row) // 8 * 8)
    bm = min(requested, cap, M)
    if bm < M:                                                     # keep (8,128) rule
        bm = max(8, (bm // 8) * 8)
    return bm


# ---------------------------------------------------------------------------
# Pallas wrapper
# ---------------------------------------------------------------------------
@functools.partial(jax.jit, static_argnames=("block_m",))
def _linear_pallas(x, w_bf, b2d, *, block_m=4096):
    """y = x @ w_bf + b2d on the MXU.
    x: [M, K] (f32 or bf16), w_bf: [K, N] bf16 (torch weight.T), b2d: [1, N] f32."""
    M, K = x.shape
    N = w_bf.shape[1]
    out_dtype = x.dtype

    bk = _pick_bk(K)
    bm = _pick_bm(M, bk, N, block_m, jnp.dtype(out_dtype).itemsize)
    grid = (pl.cdiv(M, bm), pl.cdiv(K, bk))

    return pl.pallas_call(
        _linear_kernel,
        out_shape=jax.ShapeDtypeStruct((M, N), out_dtype),
        grid_spec=pltpu.PrefetchScalarGridSpec(
            num_scalar_prefetch=0,
            grid=grid,
            in_specs=[
                pl.BlockSpec((bm, bk), lambda i, k: (i, k)),   # x tile (f32, cast in-kernel)
                pl.BlockSpec((bk, N), lambda i, k: (k, 0)),    # weight tile (bf16)
                pl.BlockSpec((1, N), lambda i, k: (0, 0)),     # resident bias (f32)
            ],
            out_specs=pl.BlockSpec((bm, N), lambda i, k: (i, 0)),
            scratch_shapes=[pltpu.VMEM((bm, N), jnp.float32)],  # f32 accumulator
        ),
        compiler_params=pltpu.CompilerParams(
            dimension_semantics=("parallel", "arbitrary"),      # M parallel, K reduction
            vmem_limit_bytes=_VMEM_LIMIT_BYTES,
        ),
    )(x, w_bf, b2d)


@jax.jit
def _linear_small(x, w_t, b):
    # Tiny problems: XLA fuses this trivially; pallas launch overhead would dominate.
    return (jnp.dot(x, w_t, preferred_element_type=jnp.float32) + b).astype(x.dtype)


_SMALL_PATH_ELEMS = 128 * 1024  # M*K below this -> plain XLA fast path


def linear_classifier_forward(x, w_t_f32, w_bf, b, b2d, *, block_m=4096,
                              force_pallas=False):
    """y = x @ W.T + b.  w_t_f32/w_bf are [D_in, D_out] (torch weight transposed)."""
    M, K = x.shape
    if not force_pallas and M * K < _SMALL_PATH_ELEMS:
        return _linear_small(x, w_t_f32, b)
    return _linear_pallas(x, w_bf, b2d, block_m=block_m)


class LinearClassifierPallas:
    """Mirror of the PyTorch module; deterministic init (torch.nn.Linear-style)."""

    def __init__(self, input_dim, output_dim, single_span, key):
        if not single_span:
            input_dim *= 2
        self.input_dim = input_dim
        self.output_dim = output_dim
        k_w, k_b = jax.random.split(key)
        bound = 1.0 / (input_dim ** 0.5)
        # torch stores weight as [out, in]; keep that convention here.
        self.weight = jax.random.uniform(
            k_w, (output_dim, input_dim), jnp.float32, -bound, bound
        )
        self.bias = jax.random.uniform(
            k_b, (output_dim,), jnp.float32, -bound, bound
        )
        # Pre-transpose / pre-cast once: no per-call XLA ops before the kernel.
        self.w_t = jnp.asarray(self.weight.T)                       # f32, fast path
        self.w_bf = jnp.asarray(self.weight.T).astype(jnp.bfloat16) # bf16, pallas path
        self.b2d = self.bias.reshape(1, output_dim).astype(jnp.float32)

    def __call__(self, inputs, *, force_pallas=False):
        # inputs: [..., input_dim] — flatten leading dims like nn.Linear does.
        lead = inputs.shape[:-1]
        x2d = inputs.reshape(-1, self.input_dim)
        y = linear_classifier_forward(
            x2d, self.w_t, self.w_bf, self.bias, self.b2d,
            force_pallas=force_pallas,
        )
        return y.reshape(*lead, self.output_dim)


if __name__ == "__main__":
    key = jax.random.PRNGKey(0)
    k_param, k_x = jax.random.split(key)

    # single_span=False doubles input_dim: 32 -> 64
    model = LinearClassifierPallas(input_dim=32, output_dim=16,
                                   single_span=False, key=k_param)

    batch = 8
    x = jax.random.normal(k_x, (batch, model.input_dim), jnp.float32)

    # Exercise the Pallas kernel explicitly (these small shapes would otherwise
    # take the fused-XLA fast path).
    y = model(x, force_pallas=True)
    jax.block_until_ready(y)

    # Reference check against plain f32 JAX (loose tol: kernel uses bf16 operands
    # with f32 accumulation).
    y_ref = x @ model.weight.T + model.bias
    assert y.shape == (batch, model.output_dim)
    assert jnp.allclose(y, y_ref, atol=5e-2, rtol=5e-2)

    # Small-batch fast path stays exact f32.
    y_fast = model(x)
    assert jnp.allclose(y_fast, y_ref, atol=1e-5, rtol=1e-5)

    print("KERNEL_OK")
</pallas_src>

<mosaic_0001>
module attributes {stable_mosaic.version = 11 : i64} {
  func.func @_linear_kernel(%arg0: i32, %arg1: i32, %arg2: memref<8x64xf32, #tpu.memory_space<vmem>>, %arg3: memref<64x16xbf16, #tpu.memory_space<vmem>>, %arg4: memref<1x16xf32, #tpu.memory_space<vmem>>, %arg5: memref<8x16xf32, #tpu.memory_space<vmem>>, %arg6: memref<8x16xf32, #tpu.memory_space<vmem>>) attributes {dimension_semantics = [#tpu.dimension_semantics<parallel>, #tpu.dimension_semantics<arbitrary>], iteration_bounds = array<i64: 1, 1>, scalar_prefetch = 0 : i64, scratch_operands = 1 : i64, tpu.core_type = #tpu.core_type<tc>, window_params = [{transform_indices = @transform_0, window_bounds = array<i64: 8, 64>}, {transform_indices = @transform_1, window_bounds = array<i64: 64, 16>}, {pipeline_mode = #tpu.pipeline_mode<synchronous>, transform_indices = @transform_2, window_bounds = array<i64: 1, 16>}, {transform_indices = @transform_3, window_bounds = array<i64: 8, 16>}]} {
    %c0_i32 = arith.constant 0 : i32
    %0 = arith.cmpi eq, %arg1, %c0_i32 : i32
    %1 = arith.extui %0 : i1 to i32
    %c0_i32_0 = arith.constant 0 : i32
    %2 = arith.cmpi ne, %1, %c0_i32_0 : i32
    scf.if %2 {
      %cst_10 = arith.constant 0.000000e+00 : f32
      %13 = vector.broadcast %cst_10 : f32 to vector<8x16xf32>
      %c0_11 = arith.constant 0 : index
      %c0_12 = arith.constant 0 : index
      %14 = vector.load %arg6[%c0_11, %c0_12] : memref<8x16xf32, #tpu.memory_space<vmem>>, vector<8x16xf32>
      tpu.vector_store %arg6[%c0_11, %c0_12], %13 {strides = array<i32>} : memref<8x16xf32, #tpu.memory_space<vmem>>, vector<8x16xf32>,
    } else {
    }
    %c0 = arith.constant 0 : index
    %c0_1 = arith.constant 0 : index
    %3 = vector.load %arg6[%c0, %c0_1] : memref<8x16xf32, #tpu.memory_space<vmem>>, vector<8x16xf32>
    %c0_2 = arith.constant 0 : index
    %c0_3 = arith.constant 0 : index
    %4 = vector.load %arg2[%c0_2, %c0_3] : memref<8x64xf32, #tpu.memory_space<vmem>>, vector<8x64xf32>
    %5 = arith.truncf %4 : vector<8x64xf32> to vector<8x64xbf16>
    %c0_4 = arith.constant 0 : index
    %c0_5 = arith.constant 0 : index
    %6 = vector.load %arg3[%c0_4, %c0_5] : memref<64x16xbf16, #tpu.memory_space<vmem>>, vector<64x16xbf16>
    %cst = arith.constant dense<0.000000e+00> : vector<8x16xf32>
    %7 = tpu.matmul %5, %6, %cst {dimension_numbers = #tpu.dot_dimension_numbers<[1], [0], [0], [1], [0, 0, 1, 1], [], []>} : vector<8x64xbf16>, vector<64x16xbf16>, vector<8x16xf32> -> vector<8x16xf32>
    %8 = arith.addf %3, %7 : vector<8x16xf32>
    %c0_6 = arith.constant 0 : index
    %c0_7 = arith.constant 0 : index
    %9 = vector.load %arg6[%c0_6, %c0_7] : memref<8x16xf32, #tpu.memory_space<vmem>>, vector<8x16xf32>
    tpu.vector_store %arg6[%c0_6, %c0_7], %8 {strides = array<i32>} : memref<8x16xf32, #tpu.memory_space<vmem>>, vector<8x16xf32>,
    %c0_i32_8 = arith.constant 0 : i32
    %10 = arith.cmpi eq, %arg1, %c0_i32_8 : i32
    %11 = arith.extui %10 : i1 to i32
    %c0_i32_9 = arith.constant 0 : i32
    %12 = arith.cmpi ne, %11, %c0_i32_9 : i32
    scf.if %12 {
      %c0_10 = arith.constant 0 : index
      %c0_11 = arith.constant 0 : index
      %13 = vector.load %arg6[%c0_10, %c0_11] : memref<8x16xf32, #tpu.memory_space<vmem>>, vector<8x16xf32>
      %c0_12 = arith.constant 0 : index
      %c0_13 = arith.constant 0 : index
      %14 = vector.load %arg4[%c0_12, %c0_13] : memref<1x16xf32, #tpu.memory_space<vmem>>, vector<1x16xf32>
      %15 = vector.broadcast %14 : vector<1x16xf32> to vector<8x16xf32>
      %16 = arith.addf %13, %15 : vector<8x16xf32>
      %c0_14 = arith.constant 0 : index
      %c0_15 = arith.constant 0 : index
      %17 = vector.load %arg5[%c0_14, %c0_15] : memref<8x16xf32, #tpu.memory_space<vmem>>, vector<8x16xf32>
      tpu.vector_store %arg5[%c0_14, %c0_15], %16 {strides = array<i32>} : memref<8x16xf32, #tpu.memory_space<vmem>>, vector<8x16xf32>,
    } else {
    }
    return
  }
  func.func @transform_0(%arg0: i32, %arg1: i32) -> (i32, i32) {
    %c0_i32 = arith.constant 0 : i32
    return %arg0, %arg1 : i32, i32
  }
  func.func @transform_1(%arg0: i32, %arg1: i32) -> (i32, i32) {
    %c0_i32 = arith.constant 0 : i32
    %c0_i32_0 = arith.constant 0 : i32
    return %arg1, %c0_i32 : i32, i32
  }
  func.func @transform_2(%arg0: i32, %arg1: i32) -> (i32, i32) {
    %c0_i32 = arith.constant 0 : i32
    %c0_i32_0 = arith.constant 0 : i32
    %c0_i32_1 = arith.constant 0 : i32
    return %c0_i32, %c0_i32_0 : i32, i32
  }
  func.func @transform_3(%arg0: i32, %arg1: i32) -> (i32, i32) {
    %c0_i32 = arith.constant 0 : i32
    %c0_i32_0 = arith.constant 0 : i32
    return %arg0, %c0_i32 : i32, i32
  }
}

</mosaic_0001>

<bundles_post_ra>
// kernel: _linear_pallas.1
= control target key start
LH: loop header
LB: loop body
LE: loop exit
PB: predicated region body
PF: predicated region fallthrough
CT: control target
= control target key end

     0   :  { %v183_v1 = vmov 0.0   ;;  %vm184_vm0 = vmmov 0   ;;  %vm20_vm1 = vcmask 130048   ;;  %s230_s0 = inlined_call_operand.vmem [shape: f32[8,64], index: 0, kind: input, shape index: {}]   ;;  %s231_s1 = inlined_call_operand.vmem [shape: bf16[64,16], index: 1, kind: input, shape index: {}]   ;;  %s232_s2 = inlined_call_operand.vmem [shape: f32[1,16], index: 2, kind: input, shape index: {}]   ;;  %s233_s3 = inlined_call_operand.hbm [shape: f32[8,16], index: 3, kind: output, shape index: {}]  }
   0x1   :  { %v157_v0 = vld [vmem:[%s231_s1 + $0x18] sm:$0xff]   ;;  %142 = vmatprep.subr.bf16.mxu0 %v183_v1  ;;  %v158_v2 = vld [vmem:[%s231_s1 + $0x10] sm:$0xff]   ;;  %150 = vmatprep.mubr.msk.bf16.mxu0 %vm184_vm0, %v183_v1  ;;  %21 = vst.msk [vmem:[#allocation2] sm:$0xff] %vm20_vm1, %v183_v1 }
   0x2   :  { %143 = vmatpush3.bf16.msra.mxu0 %v157_v0 }
   0x3   :  { %144 = vmatprep.subr.bf16.mxu0 %v183_v1 }
   0x4   :  { %8 = vsyncpa [#allocation4], 0  ;;  %v159_v3 = vld [vmem:[%s231_s1 + $0x8] sm:$0xff]   ;;  %v160_v4 = vld [vmem:[%s231_s1] sm:$0xff]   ;;  %vm57_vm2 = vcmask 523264   ;;  %s185_s1 = smov [#allocation3]  }
   0x5   :  { %v23_v5 = vld [vmem:[%s230_s0] sm:$0xff]  ;;  %s123_s24 = sshll.u32 %s185_s1, 4  ;;  %s124_s24 = int_to_ptr.vmem [resolvable:$true] %s123_s24 }
   0x6   :  { %145 = vmatpush3.bf16.msra.mxu0 %v158_v2  ;;  %v24_v6 = vpack.c.bf16 %v23_v5, %v23_v5  ;;  %v136_v13 = vld [vmem:[%s232_s2] ss:$0 sm:$0xff]  ;;  %s161_s0 = scalar_lea.vmem %s124_s24, 128  ;;  %p166_p1 = scmp.lt.s32.totalorder %s124_s24, %s124_s24 }
   0x7   :  { %146 = vmatprep.subr.bf16.mxu0 %v183_v1  ;;  %p162_p0 = scmp.ne.s32.totalorder %s124_s24, %s161_s0  ;;  %p167_p2 = scmp.lt.s32.totalorder %s161_s0, %s161_s0 }
   0x8   :  { %v22_v7 = vld [vmem:[#allocation2] sm:$0xff] }
   0x9   :  { %p168_p3 = por %p167_p2, %p166_p1 }
   0xa   :  { %147 = vmatpush3.bf16.msra.mxu0 %v159_v3 }
   0xb   :  { %148 = vmatprep.subr.bf16.mxu0 %v183_v1  ;;  %p169_p4 = pnand %p168_p3, %p162_p0 }
   0xe   :  { %149 = vmatpush3.bf16.msra.mxu0 %v160_v4 }
  0x11   :  { %151 = vmatmul.mubr.msk.bf16.vlgmr.msra.gmra.mxu0 %vm57_vm2, %v24_v6 }
  0xd1   :  { %v95_v8 = vpop.f32.mrf.mxu0 }
  0xd2   :  { %v101_v9 = vadd.f32 %v95_v8, %v22_v7 }
  0xd3   :  { %v152_v10 = vpop.f32.mrf.mxu0 }
  0xd4   :  { %103 = vst.msk [vmem:[#allocation2] sm:$0xff] %vm20_vm1, %v101_v9 }
  0xd5   :  { %v98_v11 = vpop.f32.mrf.mxu0 }
  0xd7   :  { %v153_v12 = vpop.f32.mrf.mxu0 }
  0xdb   :  { %v107_v14 = vld [vmem:[#allocation2] sm:$0xff] }
  0xdc   :  { %v115_v15 = vadd.f32 %v136_v13, %v107_v14 }
  0xde   :  { %116 = vst.msk [vmem:[#allocation3] sm:$0xff] %vm20_vm1, %v115_v15 }
  0xdf   :  { %172 = shalt.err (!%p169_p4)
}
  0xe0   :  { %126 = dma.vmem_to_hbm [thread:$0]  %s124_s24, 128, %s233_s3, [#allocation4]  }
  0xe1   :  { %181 = dma.done.wait [#allocation4], 128  }
  0xe2   :  { %182 = vsyncadd [#allocation4], 4294967168 }
  0xe3   :  { %130 = vsyncpa [#allocation4], 1 }

</bundles_post_ra>
